<compile_context>
chip_gen: v5e
topology: v5e:2x2
jax: 0.10.0
libtpu: 0.0.40
codegen_flags: <defaults>
</compile_context>

<pallas_src>
import jax
import jax.numpy as jnp
from jax.experimental import pallas as pl
from jax.experimental.pallas import tpu as pltpu


_RESIDENT_VMEM_BUDGET = 40 * 1024 * 1024   # choose fused path below this
_VMEM_LIMIT = 48 * 1024 * 1024             # safe on v5e/v6e/v7x


# --------------------------------------------------------------------------
# Fused / resident path: grid = (n,), one big-K matmul per output slice.
# --------------------------------------------------------------------------
def _t_product_fused(weights, x, out_dtype):
    n, size_out, size_in = weights.shape
    _, _, m = x.shape
    k_total = n * size_in

    # One-time flatten of the (small) weight operand:
    #   w_flat[:, j*size_in:(j+1)*size_in] == weights[j]
    w_flat = jnp.transpose(weights, (1, 0, 2)).reshape(size_out, k_total)

    def kernel(w_ref, x_ref, o_ref):
        # w_ref: (size_out, n*size_in)  VMEM-resident (constant block index)
        # x_ref: (n, size_in, m)        VMEM-resident (constant block index)
        # o_ref: (size_out, m)          output frontal slice k
        k = pl.program_id(0)
        # Circularly-shifted unfold of x for this k:
        #   rows [j*size_in:(j+1)*size_in] = x[(k - j) mod n]
        shifted = [x_ref[(k - j + n) % n] for j in range(n)]
        b = shifted[0] if n == 1 else jnp.concatenate(shifted, axis=0)
        o_ref[...] = jnp.dot(
            w_ref[...], b, preferred_element_type=jnp.float32
        ).astype(o_ref.dtype)

    return pl.pallas_call(
        kernel,
        out_shape=jax.ShapeDtypeStruct((n, size_out, m), out_dtype),
        grid_spec=pltpu.PrefetchScalarGridSpec(
            num_scalar_prefetch=0,
            grid=(n,),
            in_specs=[
                # Constant block index -> fetched from HBM only once.
                pl.BlockSpec((size_out, k_total), lambda k: (0, 0)),
                pl.BlockSpec((n, size_in, m), lambda k: (0, 0, 0)),
            ],
            out_specs=pl.BlockSpec(
                (pl.Squeezed(), size_out, m), lambda k: (k, 0, 0)
            ),
        ),
        compiler_params=pltpu.CompilerParams(
            dimension_semantics=("parallel",),
            vmem_limit_bytes=_VMEM_LIMIT,
        ),
    )(w_flat, x)


# --------------------------------------------------------------------------
# Streamed fallback: grid = (k, j), one frontal-slice matmul per step.
# --------------------------------------------------------------------------
def _tprod_stream_f32_kernel(w_ref, x_ref, o_ref):
    # f32 output: accumulate directly into the k-resident output block.
    j = pl.program_id(1)

    @pl.when(j == 0)
    def _init():
        o_ref[...] = jnp.zeros_like(o_ref)

    o_ref[...] += jnp.dot(
        w_ref[...], x_ref[...], preferred_element_type=jnp.float32
    )


def _tprod_stream_acc_kernel(w_ref, x_ref, o_ref, acc_ref):
    # Sub-f32 output: f32 VMEM scratch accumulator, cast at the last j step.
    j = pl.program_id(1)

    @pl.when(j == 0)
    def _init():
        acc_ref[...] = jnp.zeros_like(acc_ref)

    acc_ref[...] += jnp.dot(
        w_ref[...], x_ref[...], preferred_element_type=jnp.float32
    )

    @pl.when(j == pl.num_programs(1) - 1)
    def _finalize():
        o_ref[...] = acc_ref[...].astype(o_ref.dtype)


def _t_product_streamed(weights, x, out_dtype):
    n, size_out, size_in = weights.shape
    _, _, m = x.shape

    f32_out = jnp.dtype(out_dtype) == jnp.dtype(jnp.float32)
    kernel = _tprod_stream_f32_kernel if f32_out else _tprod_stream_acc_kernel
    scratch = [] if f32_out else [pltpu.VMEM((size_out, m), jnp.float32)]

    return pl.pallas_call(
        kernel,
        out_shape=jax.ShapeDtypeStruct((n, size_out, m), out_dtype),
        grid_spec=pltpu.PrefetchScalarGridSpec(
            num_scalar_prefetch=0,
            grid=(n, n),  # (k: output slice "parallel", j: reduction, last)
            in_specs=[
                pl.BlockSpec((pl.Squeezed(), size_out, size_in),
                             lambda k, j: (j, 0, 0)),
                pl.BlockSpec((pl.Squeezed(), size_in, m),
                             lambda k, j: ((k - j + n) % n, 0, 0)),
            ],
            out_specs=pl.BlockSpec((pl.Squeezed(), size_out, m),
                                   lambda k, j: (k, 0, 0)),
            scratch_shapes=scratch,
        ),
        compiler_params=pltpu.CompilerParams(
            dimension_semantics=("parallel", "arbitrary"),
            vmem_limit_bytes=_VMEM_LIMIT,
        ),
    )(weights, x)


# --------------------------------------------------------------------------
# Public wrapper (== Transform_Layer.forward)
# --------------------------------------------------------------------------
def transform_layer_forward(weights, x, *, force_streamed=False):
    """out[k] = sum_j weights[j] @ x[(k - j) mod n]   (Kilmer t-product).

    weights: (n, size_out, size_in)
    x      : (n, size_in,  m)
    returns: (n, size_out, m), dtype = result_type(weights, x)
    """
    n, size_out, size_in = weights.shape
    n2, size_in2, m = x.shape
    assert n == n2 and size_in == size_in2, "shape mismatch"

    out_dtype = jnp.result_type(weights.dtype, x.dtype)

    # Rough VMEM footprint of the fused/resident path (pipeline may
    # double-buffer even constant-index blocks, so count 2x).
    itm_w = jnp.dtype(weights.dtype).itemsize
    itm_x = jnp.dtype(x.dtype).itemsize
    itm_o = jnp.dtype(out_dtype).itemsize
    k_total = n * size_in
    resident_bytes = (
        2 * size_out * k_total * itm_w     # flattened, resident weights
        + 2 * n * size_in * m * itm_x      # full resident x
        + 2 * size_out * m * itm_o         # output slice (double-buffered)
        + k_total * m * itm_x              # shifted-unfold temporary
        + size_out * m * 4                 # f32 matmul result
    )

    if force_streamed or resident_bytes > _RESIDENT_VMEM_BUDGET:
        return _t_product_streamed(weights, x, out_dtype)
    return _t_product_fused(weights, x, out_dtype)


# --------------------------------------------------------------------------
# Pure-JAX reference
# --------------------------------------------------------------------------
def _t_product_ref(W, X):
    n = W.shape[0]
    out_dtype = jnp.result_type(W.dtype, X.dtype)
    outs = []
    for k in range(n):
        acc = jnp.zeros((W.shape[1], X.shape[2]), jnp.float32)
        for j in range(n):
            acc = acc + (W[j].astype(jnp.float32)
                         @ X[(k - j) % n].astype(jnp.float32))
        outs.append(acc)
    return jnp.stack(outs).astype(out_dtype)


if __name__ == "__main__":
    key = jax.random.PRNGKey(0)

    # (n, size_in, m, size_out)
    configs = [
        (4, 16, 8, 32),
        (4, 16, 32, 8),
    ]

    for (n, size_in, m, size_out) in configs:
        key, kw, kx = jax.random.split(key, 3)

        # Parameter init matching Transform_Layer.__init__ (bias is created
        # by the module but never used in forward, so it is omitted here).
        weights = jax.random.normal(kw, (n, size_out, size_in), jnp.float32) * 0.01
        x = jax.random.normal(kx, (n, size_in, m), jnp.float32)

        ref = _t_product_ref(weights, x)

        # Fused / resident path (default for these small shapes).
        out = jax.block_until_ready(transform_layer_forward(weights, x))
        assert out.shape == (n, size_out, m)
        assert jnp.allclose(out, ref, atol=2e-5, rtol=1e-4), \
            ("fused", n, size_in, m, size_out)

        # Streamed fallback, f32 variant (direct accumulation into o_ref).
        out_s = jax.block_until_ready(
            transform_layer_forward(weights, x, force_streamed=True))
        assert jnp.allclose(out_s, ref, atol=2e-5, rtol=1e-4), \
            ("streamed_f32", n, size_in, m, size_out)

    # Streamed fallback, scratch-accumulator variant (sub-f32 I/O).
    n, size_in, m, size_out = 4, 16, 8, 32
    key, kw, kx = jax.random.split(key, 3)
    w_bf = (jax.random.normal(kw, (n, size_out, size_in), jnp.float32)
            * 0.01).astype(jnp.bfloat16)
    x_bf = jax.random.normal(kx, (n, size_in, m),
                             jnp.float32).astype(jnp.bfloat16)
    out_bf = jax.block_until_ready(
        transform_layer_forward(w_bf, x_bf, force_streamed=True))
    ref_bf = _t_product_ref(w_bf, x_bf)
    assert out_bf.shape == (n, size_out, m)
    assert out_bf.dtype == jnp.bfloat16
    assert jnp.allclose(out_bf.astype(jnp.float32),
                        ref_bf.astype(jnp.float32), atol=2e-2, rtol=2e-2)

    print("KERNEL_OK")
</pallas_src>

<mosaic_0001>
module attributes {stable_mosaic.version = 11 : i64} {
  func.func @kernel(%arg0: i32, %arg1: memref<32x64xf32, #tpu.memory_space<vmem>>, %arg2: memref<4x16x8xf32, #tpu.memory_space<vmem>>, %arg3: memref<1x32x8xf32, #tpu.memory_space<vmem>>) attributes {dimension_semantics = [#tpu.dimension_semantics<parallel>], iteration_bounds = array<i64: 4>, scalar_prefetch = 0 : i64, scratch_operands = 0 : i64, tpu.core_type = #tpu.core_type<tc>, window_params = [{pipeline_mode = #tpu.pipeline_mode<synchronous>, transform_indices = @transform_0, window_bounds = array<i64: 32, 64>}, {pipeline_mode = #tpu.pipeline_mode<synchronous>, transform_indices = @transform_1, window_bounds = array<i64: 4, 16, 8>}, {transform_indices = @transform_2, window_bounds = array<i64: 1, 32, 8>}]} {
    %c0_i32 = arith.constant 0 : i32
    %0 = arith.subi %arg0, %c0_i32 : i32
    %c4_i32 = arith.constant 4 : i32
    %1 = arith.addi %0, %c4_i32 : i32
    %c4_i32_0 = arith.constant 4 : i32
    %c0_i32_1 = arith.constant 0 : i32
    %2 = arith.cmpi eq, %c4_i32_0, %c0_i32_1 : i32
    %c1_i32 = arith.constant 1 : i32
    %3 = arith.select %2, %c1_i32, %c4_i32_0 : i32
    %4 = arith.remsi %1, %3 : i32
    %c0_i32_2 = arith.constant 0 : i32
    %5 = arith.cmpi ne, %4, %c0_i32_2 : i32
    %c0_i32_3 = arith.constant 0 : i32
    %6 = arith.cmpi slt, %4, %c0_i32_3 : i32
    %c0_i32_4 = arith.constant 0 : i32
    %7 = arith.cmpi slt, %3, %c0_i32_4 : i32
    %8 = arith.xori %6, %7 : i1
    %9 = arith.andi %8, %5 : i1
    %10 = arith.addi %4, %3 : i32
    %11 = arith.select %9, %10, %4 : i32
    %12 = arith.index_cast %11 : i32 to index
    %c0 = arith.constant 0 : index
    %c0_5 = arith.constant 0 : index
    %13 = vector.load %arg2[%12, %c0, %c0_5] : memref<4x16x8xf32, #tpu.memory_space<vmem>>, vector<1x16x8xf32>
    %14 = vector.shape_cast %13 : vector<1x16x8xf32> to vector<16x8xf32>
    %c1_i32_6 = arith.constant 1 : i32
    %15 = arith.subi %arg0, %c1_i32_6 : i32
    %c4_i32_7 = arith.constant 4 : i32
    %16 = arith.addi %15, %c4_i32_7 : i32
    %c4_i32_8 = arith.constant 4 : i32
    %c0_i32_9 = arith.constant 0 : i32
    %17 = arith.cmpi eq, %c4_i32_8, %c0_i32_9 : i32
    %c1_i32_10 = arith.constant 1 : i32
    %18 = arith.select %17, %c1_i32_10, %c4_i32_8 : i32
    %19 = arith.remsi %16, %18 : i32
    %c0_i32_11 = arith.constant 0 : i32
    %20 = arith.cmpi ne, %19, %c0_i32_11 : i32
    %c0_i32_12 = arith.constant 0 : i32
    %21 = arith.cmpi slt, %19, %c0_i32_12 : i32
    %c0_i32_13 = arith.constant 0 : i32
    %22 = arith.cmpi slt, %18, %c0_i32_13 : i32
    %23 = arith.xori %21, %22 : i1
    %24 = arith.andi %23, %20 : i1
    %25 = arith.addi %19, %18 : i32
    %26 = arith.select %24, %25, %19 : i32
    %27 = arith.index_cast %26 : i32 to index
    %c0_14 = arith.constant 0 : index
    %c0_15 = arith.constant 0 : index
    %28 = vector.load %arg2[%27, %c0_14, %c0_15] : memref<4x16x8xf32, #tpu.memory_space<vmem>>, vector<1x16x8xf32>
    %29 = vector.shape_cast %28 : vector<1x16x8xf32> to vector<16x8xf32>
    %c2_i32 = arith.constant 2 : i32
    %30 = arith.subi %arg0, %c2_i32 : i32
    %c4_i32_16 = arith.constant 4 : i32
    %31 = arith.addi %30, %c4_i32_16 : i32
    %c4_i32_17 = arith.constant 4 : i32
    %c0_i32_18 = arith.constant 0 : i32
    %32 = arith.cmpi eq, %c4_i32_17, %c0_i32_18 : i32
    %c1_i32_19 = arith.constant 1 : i32
    %33 = arith.select %32, %c1_i32_19, %c4_i32_17 : i32
    %34 = arith.remsi %31, %33 : i32
    %c0_i32_20 = arith.constant 0 : i32
    %35 = arith.cmpi ne, %34, %c0_i32_20 : i32
    %c0_i32_21 = arith.constant 0 : i32
    %36 = arith.cmpi slt, %34, %c0_i32_21 : i32
    %c0_i32_22 = arith.constant 0 : i32
    %37 = arith.cmpi slt, %33, %c0_i32_22 : i32
    %38 = arith.xori %36, %37 : i1
    %39 = arith.andi %38, %35 : i1
    %40 = arith.addi %34, %33 : i32
    %41 = arith.select %39, %40, %34 : i32
    %42 = arith.index_cast %41 : i32 to index
    %c0_23 = arith.constant 0 : index
    %c0_24 = arith.constant 0 : index
    %43 = vector.load %arg2[%42, %c0_23, %c0_24] : memref<4x16x8xf32, #tpu.memory_space<vmem>>, vector<1x16x8xf32>
    %44 = vector.shape_cast %43 : vector<1x16x8xf32> to vector<16x8xf32>
    %c3_i32 = arith.constant 3 : i32
    %45 = arith.subi %arg0, %c3_i32 : i32
    %c4_i32_25 = arith.constant 4 : i32
    %46 = arith.addi %45, %c4_i32_25 : i32
    %c4_i32_26 = arith.constant 4 : i32
    %c0_i32_27 = arith.constant 0 : i32
    %47 = arith.cmpi eq, %c4_i32_26, %c0_i32_27 : i32
    %c1_i32_28 = arith.constant 1 : i32
    %48 = arith.select %47, %c1_i32_28, %c4_i32_26 : i32
    %49 = arith.remsi %46, %48 : i32
    %c0_i32_29 = arith.constant 0 : i32
    %50 = arith.cmpi ne, %49, %c0_i32_29 : i32
    %c0_i32_30 = arith.constant 0 : i32
    %51 = arith.cmpi slt, %49, %c0_i32_30 : i32
    %c0_i32_31 = arith.constant 0 : i32
    %52 = arith.cmpi slt, %48, %c0_i32_31 : i32
    %53 = arith.xori %51, %52 : i1
    %54 = arith.andi %53, %50 : i1
    %55 = arith.addi %49, %48 : i32
    %56 = arith.select %54, %55, %49 : i32
    %57 = arith.index_cast %56 : i32 to index
    %c0_32 = arith.constant 0 : index
    %c0_33 = arith.constant 0 : index
    %58 = vector.load %arg2[%57, %c0_32, %c0_33] : memref<4x16x8xf32, #tpu.memory_space<vmem>>, vector<1x16x8xf32>
    %59 = vector.shape_cast %58 : vector<1x16x8xf32> to vector<16x8xf32>
    %60 = tpu.concatenate %14, %29, %44, %59 in 0 : vector<16x8xf32>, vector<16x8xf32>, vector<16x8xf32>, vector<16x8xf32> -> vector<64x8xf32>
    %c0_34 = arith.constant 0 : index
    %c0_35 = arith.constant 0 : index
    %61 = vector.load %arg1[%c0_34, %c0_35] : memref<32x64xf32, #tpu.memory_space<vmem>>, vector<32x64xf32>
    %cst = arith.constant dense<0.000000e+00> : vector<32x8xf32>
    %62 = tpu.matmul %61, %60, %cst {dimension_numbers = #tpu.dot_dimension_numbers<[1], [0], [0], [1], [0, 0, 1, 1], [], []>} : vector<32x64xf32>, vector<64x8xf32>, vector<32x8xf32> -> vector<32x8xf32>
    %c0_36 = arith.constant 0 : index
    %c0_37 = arith.constant 0 : index
    %c0_38 = arith.constant 0 : index
    %63 = vector.load %arg3[%c0_36, %c0_37, %c0_38] : memref<1x32x8xf32, #tpu.memory_space<vmem>>, vector<1x32x8xf32>
    %64 = vector.shape_cast %63 : vector<1x32x8xf32> to vector<32x8xf32>
    %65 = vector.shape_cast %62 : vector<32x8xf32> to vector<1x32x8xf32>
    tpu.vector_store %arg3[%c0_36, %c0_37, %c0_38], %65 {strides = array<i32>} : memref<1x32x8xf32, #tpu.memory_space<vmem>>, vector<1x32x8xf32>,
    return
  }
  func.func @transform_0(%arg0: i32) -> (i32, i32) {
    %c0_i32 = arith.constant 0 : i32
    %c0_i32_0 = arith.constant 0 : i32
    %c0_i32_1 = arith.constant 0 : i32
    return %c0_i32, %c0_i32_0 : i32, i32
  }
  func.func @transform_1(%arg0: i32) -> (i32, i32, i32) {
    %c0_i32 = arith.constant 0 : i32
    %c0_i32_0 = arith.constant 0 : i32
    %c0_i32_1 = arith.constant 0 : i32
    %c0_i32_2 = arith.constant 0 : i32
    return %c0_i32, %c0_i32_0, %c0_i32_1 : i32, i32, i32
  }
  func.func @transform_2(%arg0: i32) -> (i32, i32, i32) {
    %c0_i32 = arith.constant 0 : i32
    %c0_i32_0 = arith.constant 0 : i32
    %c0_i32_1 = arith.constant 0 : i32
    return %arg0, %c0_i32, %c0_i32_0 : i32, i32, i32
  }
}

</mosaic_0001>

<bundles_post_ra>
// kernel: tpu_custom_call.1
= control target key start
LH: loop header
LB: loop body
LE: loop exit
PB: predicated region body
PF: predicated region fallthrough
CT: control target
= control target key end

     0   :  { %s378_s9 = smov 0   ;;  %s436_s0 = inlined_call_operand.vmem [shape: f32[32,64], index: 0, kind: input, shape index: {}]   ;;  %s437_s1 = inlined_call_operand.vmem [shape: f32[4,16,8], index: 1, kind: input, shape index: {}]   ;;  %s438_s2 = inlined_call_operand.vmem [shape: f32[4,32,8], index: 2, kind: output, shape index: {}]  }
   0x1 LB: > { %s384_s10 = sadd.s32 4294967295, %s361_s9   ;;  %p297_p0 = scmp.ge.s32.totalorder %s361_s9, 1  ;;  %s361_s9 = sphi %s378_s9, %s12_s9  }
   0x2   : > { %p102_p1 = scmp.lt.s32.totalorder %s361_s9, 5 }
   0x4   : > { %p103_p2 = pnand %p297_p0, %p102_p1 }
   0x5   : > { %s175_s11 = sadd.s32 (!%p103_p2), 1, %s384_s10  ;;  %s158_s12 = sadd.s32 (!%p103_p2), 2, %s384_s10 }
   0x6   : > { %106 = sbr.rel (%p103_p2) target bundleno = 170 (0xaa), region = 28  ;;  %p176_p3 = scmp.lt.s32.totalorder (!%p103_p2), %s175_s11, 0 }
   0x7   : > { %s177_s13 = ssub.s32 (!%p103_p2), 0, %s175_s11  ;;  %p159_p4 = scmp.lt.s32.totalorder (!%p103_p2), %s158_s12, 0 }
   0x8   : > { %s312_s14 = smin.u32 (!%p103_p2), %s177_s13, %s175_s11  ;;  %s160_s16 = ssub.s32 (!%p103_p2), 0, %s158_s12 }
   0x9   : > { %s179_s15 = sand.u32 (!%p103_p2), 3, %s312_s14   ;;  %s308_s18 = smin.u32 (!%p103_p2), %s160_s16, %s158_s12 }
   0xa   : > { %s180_s17 = ssub.s32 (!%p103_p2), 0, %s179_s15  ;;  %s162_s19 = sand.u32 (!%p103_p2), 3, %s308_s18  }
   0xb   : > { %s440_s17 = smov (!%p176_p3, %s180_s17), %s179_s15  ;;  %s391_s20 = sadd.s32 3, %s384_s10  ;;  %v194_v8 = vld [vmem:[%s436_s0 + $0x10] sm:$0xff]  ;;  %vm196_vm0 = vcmask 523264   ;;  %v195_v9 = vld [vmem:[%s436_s0 + $0x18] sm:$0xff]  ;;  %v192_v10 = vld [vmem:[%s436_s0] sm:$0xff]  ;;  %vm238_vm1 = vcmask 64512  }
   0xc   : > { %p314_p5 = scmp.lt.s32.totalorder %s440_s17, 0  ;;  %s186_s21 = sadd.s32 4, %s440_s17  ;;  %v193_v11 = vld [vmem:[%s436_s0 + $0x8] sm:$0xff] }
   0xd   : > { %s163_s22 = ssub.s32 0, %s162_s19  ;;  %p142_p6 = scmp.lt.s32.totalorder %s391_s20, 0 }
   0xe   : > { %s442_s21 = smov (!%p314_p5, %s186_s21), %s440_s17  ;;  %s444_s22 = smov (!%p159_p4, %s163_s22), %s162_s19 }
   0xf   : > { %s315_s23 = sshll.u32 %s442_s21, 4  ;;  %s143_s24 = ssub.s32 0, %s391_s20 }
  0x10   : > { %s189_s27 = scalar_lea.vmem %s437_s1, %s315_s23  ;;  %p310_p7 = scmp.lt.s32.totalorder %s444_s22, 0 }
  0x11   : > { %v191_v0 = vld [vmem:[%s189_s27 + $0x8] sm:$0xff]  ;;  %v190_v1 = vld [vmem:[%s189_s27] sm:$0xff]  ;;  %s169_s28 = sadd.s32 4, %s444_s22  ;;  %s304_s29 = smin.u32 %s143_s24, %s391_s20 }
  0x12   : > { %324 = vmatpush.msra.mxu2 %v191_v0  ;;  %325 = vmatpush.msra.mxu3 %v191_v0  ;;  %s446_s28 = smov (!%p310_p7, %s169_s28), %s444_s22  ;;  %s145_s30 = sand.u32 3, %s304_s29  }
  0x13   : > { %217 = vmatpush.msra.mxu0 %v191_v0  ;;  %323 = vmatpush.msra.mxu1 %v191_v0  ;;  %s400_s3 = sadd.s32 4, %s384_s10  ;;  %s311_s4 = sshll.u32 %s446_s28, 4 }
  0x14   : > { %327 = vmatpush.msra.mxu2 %v190_v1  ;;  %328 = vmatpush.msra.mxu3 %v190_v1  ;;  %s146_s5 = ssub.s32 0, %s145_s30  ;;  %s172_s8 = scalar_lea.vmem %s437_s1, %s311_s4 }
  0x15   : > { %218 = vmatpush.msra.mxu0 %v190_v1  ;;  %326 = vmatpush.msra.mxu1 %v190_v1  ;;  %v174_v2 = vld [vmem:[%s172_s8 + $0x8] sm:$0xff]  ;;  %v173_v3 = vld [vmem:[%s172_s8] sm:$0xff]  ;;  %s448_s5 = smov (!%p142_p6, %s146_s5), %s145_s30  ;;  %s126_s11 = ssub.s32 0, %s400_s3 }
  0x16   : > { %330 = vmatpush.msra.mxu2 %v174_v2  ;;  %331 = vmatpush.msra.mxu3 %v174_v2  ;;  %p306_p8 = scmp.lt.s32.totalorder %s448_s5, 0  ;;  %s152_s12 = sadd.s32 4, %s448_s5 }
  0x17   : > { %219 = vmatpush.msra.mxu0 %v174_v2  ;;  %329 = vmatpush.msra.mxu1 %v174_v2  ;;  %p125_p9 = scmp.lt.s32.totalorder %s400_s3, 0  ;;  %s300_s13 = smin.u32 %s126_s11, %s400_s3 }
  0x18   : > { %333 = vmatpush.msra.mxu2 %v173_v3  ;;  %334 = vmatpush.msra.mxu3 %v173_v3  ;;  %s450_s12 = smov (!%p306_p8, %s152_s12), %s448_s5  ;;  %s128_s14 = sand.u32 3, %s300_s13  }
  0x19   : > { %220 = vmatpush.msra.mxu0 %v173_v3  ;;  %332 = vmatpush.msra.mxu1 %v173_v3  ;;  %s307_s15 = sshll.u32 %s450_s12, 4  ;;  %s129_s16 = ssub.s32 0, %s128_s14 }
  0x1a   : > { %s155_s19 = scalar_lea.vmem %s437_s1, %s307_s15  ;;  %s452_s16 = smov (!%p125_p9, %s129_s16), %s128_s14 }
  0x1b   : > { %v157_v4 = vld [vmem:[%s155_s19 + $0x8] sm:$0xff]  ;;  %v156_v5 = vld [vmem:[%s155_s19] sm:$0xff]  ;;  %p302_p10 = scmp.lt.s32.totalorder %s452_s16, 0  ;;  %s135_s20 = sadd.s32 4, %s452_s16 }
  0x1c   : > { %336 = vmatpush.msra.mxu2 %v157_v4  ;;  %337 = vmatpush.msra.mxu3 %v157_v4  ;;  %p119_p11 = scmp.lt.s32.totalorder %s384_s10, 3 }
  0x1d   : > { %221 = vmatpush.msra.mxu0 %v157_v4  ;;  %335 = vmatpush.msra.mxu1 %v157_v4  ;;  %s454_s20 = smov (!%p302_p10, %s135_s20), %s452_s16 }
  0x1e   : > { %339 = vmatpush.msra.mxu2 %v156_v5  ;;  %340 = vmatpush.msra.mxu3 %v156_v5  ;;  %s303_s21 = sshll.u32 %s454_s20, 4  ;;  %s456_s10 = smov (!%p119_p11, %s384_s10), 3 }
  0x1f   : > { %222 = vmatpush.msra.mxu0 %v156_v5  ;;  %338 = vmatpush.msra.mxu1 %v156_v5  ;;  %s138_s24 = scalar_lea.vmem %s437_s1, %s303_s21  ;;  %s322_s5 = sshll.u32 %s456_s10, 5 }
  0x20   : > { %v140_v6 = vld [vmem:[%s138_s24 + $0x8] sm:$0xff]  ;;  %v139_v7 = vld [vmem:[%s138_s24] sm:$0xff]  ;;  %s123_s8 = scalar_lea.vmem %s438_s2, %s322_s5 }
  0x21   : > { %342 = vmatpush.msra.mxu2 %v140_v6  ;;  %343 = vmatpush.msra.mxu3 %v140_v6 }
  0x22   : > { %223 = vmatpush.msra.mxu0 %v140_v6  ;;  %341 = vmatpush.msra.mxu1 %v140_v6 }
  0x23   : > { %345 = vmatpush.msra.mxu2 %v139_v7  ;;  %346 = vmatpush.msra.mxu3 %v139_v7 }
  0x24   : > { %318 = vmatmul.msk.f32.vlgmr.msra.gmra.mxu2 %vm196_vm0, %v194_v8  ;;  %319 = vmatmul.msk.f32.vlgmr.msra.gmra.mxu3 %vm196_vm0, %v195_v9 }
  0x25   : > { %224 = vmatpush.msra.mxu0 %v139_v7  ;;  %344 = vmatpush.msra.mxu1 %v139_v7 }
  0x26   : > { %316 = vmatmul.msk.f32.vlgmr.msra.gmra.mxu0 %vm196_vm0, %v192_v10  ;;  %317 = vmatmul.msk.f32.vlgmr.msra.gmra.mxu1 %vm196_vm0, %v193_v11 }
  0xa3   : > { %v226_v12 = vpop.f32.mrf.mxu0  ;;  %v229_v13 = vpop.f32.mrf.mxu1 }
  0xa4   : > { %239 = vst.msk [vmem:[%s123_s8] sm:$0xff] %vm238_vm1, %v226_v12 }
  0xa5   : > { %240 = vst.msk [vmem:[%s123_s8 + $0x8] sm:$0xff] %vm238_vm1, %v229_v13 }
  0xa7   : > { %v232_v14 = vpop.f32.mrf.mxu2  ;;  %v235_v15 = vpop.f32.mrf.mxu3 }
  0xa8   : > { %241 = vst.msk [vmem:[%s123_s8 + $0x10] sm:$0xff] %vm238_vm1, %v232_v14 }
  0xa9   : > { %242 = vst.msk [vmem:[%s123_s8 + $0x18] sm:$0xff] %vm238_vm1, %v235_v15 }
  0xaa PF: > { %s12_s9 = sadd.s32 1, %s361_s9  }
  0xab   : > { %p9_p12 = scmp.ge.s32.totalorder %s12_s9, 6  }
  0xad   :  { %11 = sbr.rel (!%p9_p12) target bundleno = 1 (0x1), region = 59 }

</bundles_post_ra>
